<compile_context>
chip_gen: v7x
topology: tpu7x:2x2x1
jax: 0.10.0
libtpu: 0.0.40
codegen_flags: <defaults>
</compile_context>

<pallas_src>
import math

import jax
import jax.numpy as jnp
from jax import lax
from jax.experimental import pallas as pl
from jax.experimental.pallas import tpu as pltpu

BN_EPS = 1e-5
LANE = 128


def _round_up(n, m):
    return ((n + m - 1) // m) * m


def _vmem_budget_bytes():
    """Generation-aware scoped-VMEM budget: 3/4 of physical VMEM.

    ~96 MiB on v5e/v6e (128 MiB physical), ~48 MiB on v7x (64 MiB per TC).
    Falls back to the most conservative (v7x) figure if the query fails.
    """
    cap = 64 * 1024 * 1024
    try:
        cap = int(pltpu.get_tpu_info().vmem_capacity_bytes)
    except Exception:
        pass
    return (cap * 3) // 4


def _pick_tile_n(hp, b, w_itemsize, xm_itemsize, budget_bytes):
    """Largest multiple-of-128 divisor of hp whose working set fits the VMEM budget.

    Working set: resident x (conservatively counted double-buffered), 2x (tn, hp)
    weight tiles, 2x (b, tn) residual + output f32 tiles, 2x (2, tn) gamma/beta tiles,
    plus fixed headroom for compiler scratch.  Per-tile weight bytes are additionally
    capped at ~16 MiB so the software pipeline keeps enough steps to overlap DMA.
    """
    headroom = 4 << 20
    resident_x = 2 * b * hp * xm_itemsize               # conservative: assume 2 buffers
    avail = budget_bytes - resident_x - headroom
    per_lane = (2 * hp * w_itemsize                      # weight tile, double-buffered
                + 2 * b * 4                              # residual tile (f32)
                + 2 * b * 4                              # output tile (f32)
                + 2 * 2 * 4)                             # gamma/beta tile
    if avail > per_lane * LANE:
        max_tn_fit = avail // per_lane
    else:
        max_tn_fit = LANE
    max_tn_weight = max(LANE, (16 << 20) // (hp * w_itemsize))
    limit = max(LANE, min(max_tn_fit, max_tn_weight))
    if hp >= 2 * LANE:
        limit = min(limit, hp // 2)                      # >=2 tiles -> both v7x TCs used
    best = LANE
    cand = LANE
    while cand <= min(hp, limit):
        if hp % cand == 0:
            best = cand
        cand += LANE
    return best


def residual_block_kernel(xm_ref, w_ref, gb_ref, xres_ref, o_ref):
    # xm_ref  : (B, Hp)  matmul operand (bf16 by default), resident across the grid
    # w_ref   : (TN, Hp) weight tile, PyTorch (out_features, in_features) layout
    # gb_ref  : (2, TN)  row 0 = gamma, row 1 = beta (f32)
    # xres_ref: (B, TN)  f32 residual tile (original x columns for this feature tile)
    # o_ref   : (B, TN)
    # Linear for this tile of output features: y = x @ W[tile]^T  (contract the
    # "in_features" axes directly -> contiguous weight-row DMA, no transpose in HBM).
    # The linear bias is omitted: it is exactly cancelled by the BN mean subtraction.
    y = lax.dot_general(
        xm_ref[...], w_ref[...],
        dimension_numbers=(((1,), (1,)), ((), ())),
        preferred_element_type=jnp.float32,
    )                                                    # (B, TN), f32

    # BatchNorm1d training mode: per-feature stats over the FULL batch (axis 0),
    # biased variance.  Exact because the batch axis is never tiled.
    mean = jnp.mean(y, axis=0, keepdims=True)            # (1, TN)
    diff = y - mean
    var = jnp.mean(diff * diff, axis=0, keepdims=True)   # (1, TN)

    gb = gb_ref[...]                                     # (2, TN) f32
    scale = gb[0:1, :] * lax.rsqrt(var + BN_EPS)         # rsqrt -> EUP slot (cheap)
    bn = diff * scale + gb[1:2, :]                       # single FMA per element

    # ReLU + residual (f32 skip path).
    o_ref[...] = (jnp.maximum(bn, 0.0) + xres_ref[...]).astype(o_ref.dtype)


def residual_block(x, weight, bias, gamma, beta, *, matmul_dtype=jnp.bfloat16):
    """Fused Linear -> BatchNorm1d(train) -> ReLU -> +x.

    x: (B, H) float32; weight: (H, H) PyTorch (out, in) layout; bias/gamma/beta: (H,).
    `bias` is accepted for API parity but unused: with training-mode BatchNorm right
    after the linear it is exactly cancelled by the batch-mean subtraction.
    `matmul_dtype` controls the MXU operand dtype (bf16 default: halves weight DMA);
    BN statistics accumulate in f32 and the residual/affine stay in f32.
    """
    del bias  # provably cancelled by BN mean subtraction (output-identical)

    B, H = x.shape
    Hp = max(_round_up(H, LANE), LANE)
    pad = Hp - H

    if pad:
        # Zero-padded features are inert: y == 0 -> BN 0 -> ReLU 0 -> residual 0.
        x_p = jnp.pad(x, ((0, 0), (0, pad)))
        w_p = jnp.pad(weight, ((0, pad), (0, pad)))
        g_p = jnp.pad(gamma, (0, pad), constant_values=1.0)
        be_p = jnp.pad(beta, (0, pad))
    else:
        x_p, w_p, g_p, be_p = x, weight, gamma, beta

    matmul_dtype = jnp.dtype(matmul_dtype)
    xm = x_p if x_p.dtype == matmul_dtype else x_p.astype(matmul_dtype)   # cast ONCE
    w_m = w_p if w_p.dtype == matmul_dtype else w_p.astype(matmul_dtype)
    gb = jnp.stack([g_p, be_p], axis=0).astype(jnp.float32)               # (2, Hp)

    budget = _vmem_budget_bytes()
    tn = _pick_tile_n(Hp, B, matmul_dtype.itemsize, matmul_dtype.itemsize, budget)
    grid = (Hp // tn,)

    out = pl.pallas_call(
        residual_block_kernel,
        out_shape=jax.ShapeDtypeStruct((B, Hp), x.dtype),
        grid=grid,
        in_specs=[
            pl.BlockSpec((B, Hp), lambda j: (0, 0)),     # matmul x, resident across grid
            pl.BlockSpec((tn, Hp), lambda j: (j, 0)),    # weight tile (out-feature rows)
            pl.BlockSpec((2, tn), lambda j: (0, j)),     # gamma/beta, one small DMA
            pl.BlockSpec((B, tn), lambda j: (0, j)),     # f32 residual columns
        ],
        out_specs=pl.BlockSpec((B, tn), lambda j: (0, j)),
        compiler_params=pltpu.CompilerParams(
            dimension_semantics=("parallel",),           # feature tiles independent
            vmem_limit_bytes=int(budget),                # raise scoped-VMEM for big tiles
        ),
    )(xm, w_m, gb, x_p)

    return out[:, :H] if pad else out


def residual_block_ref(x, weight, bias, gamma, beta):
    """Pure-JAX reference matching the PyTorch training-mode forward."""
    y = jnp.dot(x, weight.T, precision=lax.Precision.HIGHEST) + bias
    mean = jnp.mean(y, axis=0, keepdims=True)
    var = jnp.mean((y - mean) ** 2, axis=0, keepdims=True)
    y_hat = (y - mean) / jnp.sqrt(var + BN_EPS)
    return jnp.maximum(gamma * y_hat + beta, 0.0) + x


if __name__ == "__main__":
    key = jax.random.PRNGKey(0)

    def make_inputs(batch, hidden, k):
        kx, kw, kb = jax.random.split(k, 3)
        x = jax.random.normal(kx, (batch, hidden), dtype=jnp.float32)
        bound = 1.0 / math.sqrt(hidden)
        weight = jax.random.uniform(kw, (hidden, hidden), jnp.float32, -bound, bound)
        bias = jax.random.uniform(kb, (hidden,), jnp.float32, -bound, bound)
        gamma = jnp.ones((hidden,), jnp.float32)   # BatchNorm1d default weight
        beta = jnp.zeros((hidden,), jnp.float32)   # BatchNorm1d default bias
        return x, weight, bias, gamma, beta

    k1, k2 = jax.random.split(key)

    # 1) Module-sized toy case (B=8, H=32): exercises the lane-padding path.
    args = make_inputs(8, 32, k1)
    ref = residual_block_ref(*args)

    out_f32 = jax.block_until_ready(residual_block(*args, matmul_dtype=jnp.float32))
    assert out_f32.shape == (8, 32)
    assert jnp.allclose(out_f32, ref, atol=1e-5, rtol=1e-5), "f32 mismatch (8, 32)"

    out_bf16 = jax.block_until_ready(residual_block(*args))     # default bf16 matmul
    assert jnp.allclose(out_bf16, ref, atol=5e-2, rtol=5e-2), "bf16 mismatch (8, 32)"

    # 2) Lane-dense multi-tile case (B=16, H=256): grid of 2 feature tiles, no padding.
    args_l = make_inputs(16, 256, k2)
    ref_l = residual_block_ref(*args_l)

    out_l_f32 = jax.block_until_ready(residual_block(*args_l, matmul_dtype=jnp.float32))
    assert out_l_f32.shape == (16, 256)
    assert jnp.allclose(out_l_f32, ref_l, atol=1e-3, rtol=1e-3), "f32 mismatch (16, 256)"

    out_l_bf16 = jax.block_until_ready(residual_block(*args_l))
    assert jnp.allclose(out_l_bf16, ref_l, atol=5e-2, rtol=5e-2), "bf16 mismatch (16, 256)"

    print("KERNEL_OK")
</pallas_src>

<mosaic_0001>
module attributes {stable_mosaic.version = 11 : i64} {
  func.func @residual_block_kernel(%arg0: i32, %arg1: memref<8x128xf32, #tpu.memory_space<vmem>>, %arg2: memref<128x128xf32, #tpu.memory_space<vmem>>, %arg3: memref<2x128xf32, #tpu.memory_space<vmem>>, %arg4: memref<8x128xf32, #tpu.memory_space<vmem>>, %arg5: memref<8x128xf32, #tpu.memory_space<vmem>>) attributes {dimension_semantics = [#tpu.dimension_semantics<parallel>], iteration_bounds = array<i64: 1>, scalar_prefetch = 0 : i64, scratch_operands = 0 : i64, tpu.core_type = #tpu.core_type<tc>, window_params = [{pipeline_mode = #tpu.pipeline_mode<synchronous>, transform_indices = @transform_0, window_bounds = array<i64: 8, 128>}, {transform_indices = @transform_1, window_bounds = array<i64: 128, 128>}, {transform_indices = @transform_2, window_bounds = array<i64: 2, 128>}, {transform_indices = @transform_3, window_bounds = array<i64: 8, 128>}, {transform_indices = @transform_4, window_bounds = array<i64: 8, 128>}]} {
    %c0 = arith.constant 0 : index
    %c0_0 = arith.constant 0 : index
    %0 = vector.load %arg1[%c0, %c0_0] : memref<8x128xf32, #tpu.memory_space<vmem>>, vector<8x128xf32>
    %c0_1 = arith.constant 0 : index
    %c0_2 = arith.constant 0 : index
    %1 = vector.load %arg2[%c0_1, %c0_2] : memref<128x128xf32, #tpu.memory_space<vmem>>, vector<128x128xf32>
    %cst = arith.constant dense<0.000000e+00> : vector<8x128xf32>
    %2 = tpu.matmul %0, %1, %cst {dimension_numbers = #tpu.dot_dimension_numbers<[1], [1], [0], [0], [0, 0, 1, 0], [], []>} : vector<8x128xf32>, vector<128x128xf32>, vector<8x128xf32> -> vector<8x128xf32>
    %cst_3 = arith.constant dense<0.000000e+00> : vector<128xf32>
    %3 = vector.multi_reduction <add>, %2, %cst_3 [0] : vector<8x128xf32> to vector<128xf32>
    %4 = vector.shape_cast %3 : vector<128xf32> to vector<1x128xf32>
    %cst_4 = arith.constant 8.000000e+00 : f32
    %5 = vector.broadcast %cst_4 : f32 to vector<1x128xf32>
    %6 = arith.divf %4, %5 : vector<1x128xf32>
    %7 = vector.broadcast %6 : vector<1x128xf32> to vector<8x128xf32>
    %8 = arith.subf %2, %7 : vector<8x128xf32>
    %9 = arith.mulf %8, %8 : vector<8x128xf32>
    %cst_5 = arith.constant dense<0.000000e+00> : vector<128xf32>
    %10 = vector.multi_reduction <add>, %9, %cst_5 [0] : vector<8x128xf32> to vector<128xf32>
    %11 = vector.shape_cast %10 : vector<128xf32> to vector<1x128xf32>
    %cst_6 = arith.constant 8.000000e+00 : f32
    %12 = vector.broadcast %cst_6 : f32 to vector<1x128xf32>
    %13 = arith.divf %11, %12 : vector<1x128xf32>
    %c0_7 = arith.constant 0 : index
    %c0_8 = arith.constant 0 : index
    %14 = vector.load %arg3[%c0_7, %c0_8] : memref<2x128xf32, #tpu.memory_space<vmem>>, vector<2x128xf32>
    %15 = vector.extract_strided_slice %14 {offsets = [0, 0], sizes = [1, 128], strides = [1, 1]} : vector<2x128xf32> to vector<1x128xf32>
    %cst_9 = arith.constant 9.99999974E-6 : f32
    %16 = vector.broadcast %cst_9 : f32 to vector<1x128xf32>
    %17 = arith.addf %13, %16 : vector<1x128xf32>
    %18 = math.rsqrt %17 : vector<1x128xf32>
    %19 = arith.mulf %15, %18 : vector<1x128xf32>
    %20 = vector.broadcast %19 : vector<1x128xf32> to vector<8x128xf32>
    %21 = arith.mulf %8, %20 : vector<8x128xf32>
    %22 = vector.extract_strided_slice %14 {offsets = [1, 0], sizes = [1, 128], strides = [1, 1]} : vector<2x128xf32> to vector<1x128xf32>
    %23 = vector.broadcast %22 : vector<1x128xf32> to vector<8x128xf32>
    %24 = arith.addf %21, %23 : vector<8x128xf32>
    %cst_10 = arith.constant 0.000000e+00 : f32
    %25 = vector.broadcast %cst_10 : f32 to vector<8x128xf32>
    %26 = arith.maximumf %24, %25 : vector<8x128xf32>
    %c0_11 = arith.constant 0 : index
    %c0_12 = arith.constant 0 : index
    %27 = vector.load %arg4[%c0_11, %c0_12] : memref<8x128xf32, #tpu.memory_space<vmem>>, vector<8x128xf32>
    %28 = arith.addf %26, %27 : vector<8x128xf32>
    %c0_13 = arith.constant 0 : index
    %c0_14 = arith.constant 0 : index
    %29 = vector.load %arg5[%c0_13, %c0_14] : memref<8x128xf32, #tpu.memory_space<vmem>>, vector<8x128xf32>
    tpu.vector_store %arg5[%c0_13, %c0_14], %28 {strides = array<i32>} : memref<8x128xf32, #tpu.memory_space<vmem>>, vector<8x128xf32>,
    return
  }
  func.func @transform_0(%arg0: i32) -> (i32, i32) {
    %c0_i32 = arith.constant 0 : i32
    %c0_i32_0 = arith.constant 0 : i32
    %c0_i32_1 = arith.constant 0 : i32
    return %c0_i32, %c0_i32_0 : i32, i32
  }
  func.func @transform_1(%arg0: i32) -> (i32, i32) {
    %c0_i32 = arith.constant 0 : i32
    %c0_i32_0 = arith.constant 0 : i32
    return %arg0, %c0_i32 : i32, i32
  }
  func.func @transform_2(%arg0: i32) -> (i32, i32) {
    %c0_i32 = arith.constant 0 : i32
    %c0_i32_0 = arith.constant 0 : i32
    return %c0_i32, %arg0 : i32, i32
  }
  func.func @transform_3(%arg0: i32) -> (i32, i32) {
    %c0_i32 = arith.constant 0 : i32
    %c0_i32_0 = arith.constant 0 : i32
    return %c0_i32, %arg0 : i32, i32
  }
  func.func @transform_4(%arg0: i32) -> (i32, i32) {
    %c0_i32 = arith.constant 0 : i32
    %c0_i32_0 = arith.constant 0 : i32
    return %c0_i32, %arg0 : i32, i32
  }
}

</mosaic_0001>

<bundles_post_ra>
// kernel: tpu_custom_call.1
= control target key start
LH: loop header
LB: loop body
LE: loop exit
PB: predicated region body
PF: predicated region fallthrough
CT: control target
= control target key end

     0   :  { %9 = vsyncpa [#allocation3], 0  ;;  %s422_s0 = inlined_call_operand.hbm [shape: f32[8,128], index: 0, kind: input, shape index: {}]   ;;  %s423_s1 = inlined_call_operand.hbm [shape: f32[128,128], index: 1, kind: input, shape index: {}]   ;;  %s424_s2 = inlined_call_operand.vmem [shape: f32[2,128], index: 2, kind: input, shape index: {}]   ;;  %s425_s3 = inlined_call_operand.vmem [shape: f32[8,128], index: 3, kind: input, shape index: {}]   ;;  %s426_s4 = inlined_call_operand.hbm [shape: f32[8,128], index: 4, kind: output, shape index: {}]  }
   0x1   :  { %10 = vsyncpa [#allocation6], 0 }
   0x2   :  { %11 = vsyncpa [#allocation4], 0  ;;  %s340_s15 = smov [#allocation2]   ;;  %s341_s17 = smov [#allocation5]  }
   0x3   :  { %s18_s16 = sshll.u32 %s340_s15, 4  ;;  %s27_s18 = sshll.u32 %s341_s17, 4  ;;  %s19_s16 = int_to_ptr.vmem [resolvable:$true] %s18_s16  ;;  %s373_s18 = int_to_ptr.vmem [resolvable:$true] %s27_s18 }
   0x4   :  { %s268_s21 = scalar_lea.hbm %s422_s0, 128 }
   0x5   :  { %p269_p0 = scmp.ne.s32.totalorder %s422_s0, %s268_s21  ;;  %p272_p1 = scmp.lt.u32.totalorder %s268_s21, %s422_s0 }
   0x7   :  { %p274_p2 = pnand %p272_p1, %p269_p0 }
   0x9   :  { %277 = shalt.err (!%p274_p2)
}
   0xa   :  { %s278_s26 = scalar_lea.vmem %s19_s16, 128  ;;  %p283_p4 = scmp.lt.s32.totalorder %s19_s16, %s19_s16 }
   0xb   :  { %p279_p3 = scmp.ne.s32.totalorder %s19_s16, %s278_s26  ;;  %p284_p5 = scmp.lt.s32.totalorder %s278_s26, %s278_s26 }
   0xd   :  { %p285_p6 = por %p284_p5, %p283_p4 }
   0xf   :  { %p286_p7 = pnand %p285_p6, %p279_p3 }
  0x11   :  { %289 = shalt.err (!%p286_p7)
}
  0x12   :  { %21 = dma.hbm_to_vmem [thread:$0]  %s422_s0, 128, %s19_s16, [#allocation3]  }
  0x13   :  { %s290_s5 = scalar_lea.hbm %s423_s1, 2048 }
  0x14   :  { %p291_p8 = scmp.ne.s32.totalorder %s423_s1, %s290_s5  ;;  %p294_p9 = scmp.lt.u32.totalorder %s290_s5, %s423_s1 }
  0x16   :  { %p296_p10 = pnand %p294_p9, %p291_p8 }
  0x18   :  { %299 = shalt.err (!%p296_p10)
}
  0x19   :  { %s300_s10 = scalar_lea.vmem %s373_s18, 2048  ;;  %p305_p12 = scmp.lt.s32.totalorder %s373_s18, %s373_s18 }
  0x1a   :  { %p301_p11 = scmp.ne.s32.totalorder %s373_s18, %s300_s10  ;;  %p306_p13 = scmp.lt.s32.totalorder %s300_s10, %s300_s10 }
  0x1c   :  { %p307_p0 = por %p306_p13, %p305_p12 }
  0x1e   :  { %p308_p1 = pnand %p307_p0, %p301_p11 }
  0x20   :  { %311 = shalt.err (!%p308_p1)
}
  0x21   :  { %s342_s0 = smov 128   ;;  %s343_s11 = smov 8  }
  0x22   :  { %33 = dma.hbm_to_vmem [thread:$0]  %s423_s1, 2048, %s373_s18, [#allocation6], %s342_s0, %s342_s0, %s343_s11  }
  0x23   :  { %334 = dma.done.wait [#allocation3], 128  }
  0x24   :  { %335 = vsyncadd [#allocation3], 4294967168 }
  0x25   :  { %336 = dma.done.wait [#allocation6], 2048  }
  0x26   :  { %337 = vsyncadd [#allocation6], 4294965248  ;;  %v344_v0 = vmov 0.0|0.0   ;;  %vm345_vm0 = vmmov 0   ;;  %v346_v1 = vmov 0.0   ;;  %v45_v2 = vld [vmem:[#allocation5] sm:$0xff]  ;;  %v152_v46 = vlaneseq }
  0x27   :  { %234 = vmatprep.subr.bf16.mxu0 %v344_v0  ;;  %231 = vmatprep.mubr.msk.f32.mxu0 %vm345_vm0, %v346_v1  ;;  %v46_v3 = vld [vmem:[#allocation5 + $0x8] sm:$0xff]  ;;  %v47_v5 = vld [vmem:[#allocation5 + $0x10] sm:$0xff]  ;;  %v48_v6 = vld [vmem:[#allocation5 + $0x18] sm:$0xff]  ;;  %s347_s17 = smov [#allocation7]  }
  0x28   :  { %v235_v4 = vpack.c.bf16 %v46_v3, %v45_v2  ;;  %v238_v7 = vpack.c.bf16 %v48_v6, %v47_v5  ;;  %v49_v8 = vld [vmem:[#allocation5 + $0x20] sm:$0xff]  ;;  %v50_v9 = vld [vmem:[#allocation5 + $0x28] sm:$0xff]  ;;  %v51_v11 = vld [vmem:[#allocation5 + $0x30] sm:$0xff]  ;;  %v153_v47 = vshrl.u32 %v152_v46, 7  ;;  %s172_s18 = sshll.u32 %s347_s17, 4  ;;  %s173_s18 = int_to_ptr.vmem [resolvable:$true] %s172_s18 }
  0x29   :  { %v241_v10 = vpack.c.bf16 %v50_v9, %v49_v8  ;;  %v52_v12 = vld [vmem:[#allocation5 + $0x38] sm:$0xff]  ;;  %v53_v14 = vld [vmem:[#allocation5 + $0x40] sm:$0xff]  ;;  %v54_v15 = vld [vmem:[#allocation5 + $0x48] sm:$0xff]  ;;  %s312_s19 = scalar_lea.vmem %s173_s18, 128  ;;  %p317_p3 = scmp.lt.s32.totalorder %s173_s18, %s173_s18 }
  0x2a   :  { %236 = vmatpush3.bf16.xpose.msra.mxu0 %v235_v4  ;;  %v244_v13 = vpack.c.bf16 %v52_v12, %v51_v11  ;;  %v247_v16 = vpack.c.bf16 %v54_v15, %v53_v14  ;;  %v55_v17 = vld [vmem:[#allocation5 + $0x50] sm:$0xff]  ;;  %v56_v18 = vld [vmem:[#allocation5 + $0x58] sm:$0xff]  ;;  %v57_v20 = vld [vmem:[#allocation5 + $0x60] sm:$0xff]  ;;  %v154_v49 = vsub.s32 0, %v153_v47  ;;  %v159_v50 = vsub.s32 1, %v153_v47  ;;  %p313_p2 = scmp.ne.s32.totalorder %s173_s18, %s312_s19  ;;  %p318_p4 = scmp.lt.s32.totalorder %s312_s19, %s312_s19 }
  0x2b   :  { %237 = vmatprep.subr.bf16.mxu0 %v344_v0  ;;  %v250_v19 = vpack.c.bf16 %v56_v18, %v55_v17  ;;  %v58_v21 = vld [vmem:[#allocation5 + $0x68] sm:$0xff]  ;;  %v59_v23 = vld [vmem:[#allocation5 + $0x70] sm:$0xff]  ;;  %v60_v24 = vld [vmem:[#allocation5 + $0x78] sm:$0xff] }
  0x2c   :  { %v253_v22 = vpack.c.bf16 %v58_v21, %v57_v20  ;;  %v256_v25 = vpack.c.bf16 %v60_v24, %v59_v23  ;;  %v44_v26 = vld [vmem:[#allocation2] sm:$0xff]  ;;  %p319_p5 = por %p318_p4, %p317_p3 }
  0x2d   :  { %v148_v48 = vld [vmem:[%s424_s2] sm:$0x3] }
  0x2e   :  { %v160_v54 = vrot.slane %v148_v48, %v159_v50  ;;  %v163_v57 = vld [vmem:[%s425_s3] sm:$0xff]  ;;  %p320_p6 = pnand %p319_p5, %p313_p2 }
  0x32   :  { %239 = vmatpush3.bf16.xpose.msra.mxu0 %v238_v7 }
  0x33   :  { %240 = vmatprep.subr.bf16.mxu0 %v344_v0 }
  0x3a   :  { %242 = vmatpush3.bf16.xpose.msra.mxu0 %v241_v10 }
  0x3b   :  { %243 = vmatprep.subr.bf16.mxu0 %v344_v0 }
  0x42   :  { %245 = vmatpush3.bf16.xpose.msra.mxu0 %v244_v13 }
  0x43   :  { %246 = vmatprep.subr.bf16.mxu0 %v344_v0 }
  0x4a   :  { %248 = vmatpush3.bf16.xpose.msra.mxu0 %v247_v16 }
  0x4b   :  { %249 = vmatprep.subr.bf16.mxu0 %v344_v0 }
  0x52   :  { %251 = vmatpush3.bf16.xpose.msra.mxu0 %v250_v19 }
  0x53   :  { %252 = vmatprep.subr.bf16.mxu0 %v344_v0 }
  0x5a   :  { %254 = vmatpush3.bf16.xpose.msra.mxu0 %v253_v22 }
  0x5b   :  { %255 = vmatprep.subr.bf16.mxu0 %v344_v0 }
  0x62   :  { %257 = vmatpush3.bf16.xpose.msra.mxu0 %v256_v25 }
  0x69   :  { %232 = vmatmul.mubr.f32.vlgmr.msra.gmra.mrb[0].mxu0 %v44_v26 }
 0x13c   :  { %v127_v27 = vpop.f32.mrb[0].mxu0 }
 0x13d   :  { %v131_v28 = vrot.slane %v127_v27, 4  ;;  %v233_v29 = vpop.f32.mrb[1].mxu0 }
 0x13f   :  { %v132_v30 = vadd.f32 %v131_v28, %v127_v27 }
 0x141   :  { %v133_v31 = vrot.slane %v132_v30, 2 }
 0x143   :  { %v134_v32 = vadd.f32 %v133_v31, %v132_v30 }
 0x145   :  { %v135_v33 = vrot.slane %v134_v32, 1 }
 0x147   :  { %v136_v34 = vadd.f32 %v135_v33, %v134_v32 }
 0x149   :  { %v138_v35 = vmul.f32 0.125, %v136_v34 }
 0x14b   :  { %v139_v36 = vsub.f32 %v127_v27, %v138_v35 }
 0x14d   :  { %v140_v37 = vmul.f32 %v139_v36, %v139_v36 }
 0x14f   :  { %v141_v38 = vrot.slane %v140_v37, 4 }
 0x151   :  { %v142_v39 = vadd.f32 %v141_v38, %v140_v37 }
 0x153   :  { %v143_v40 = vrot.slane %v142_v39, 2 }
 0x155   :  { %v144_v41 = vadd.f32 %v143_v40, %v142_v39 }
 0x157   :  { %v145_v42 = vrot.slane %v144_v41, 1 }
 0x159   :  { %v146_v43 = vadd.f32 %v145_v42, %v144_v41 }
 0x15b   :  { %v147_v44 = vmul.f32 0.125, %v146_v43 }
 0x15d   :  { %v149_v45 = vadd.f32 1e-05, %v147_v44 }
 0x15f   :  { %266 = vrsqrt.f32 %v149_v45 }
 0x169   :  { %v267_v51 = vpop.eup %266 }
 0x16a   :  { %v151_v52 = vmul.f32 %v267_v51, %v148_v48 }
 0x16c   :  { %v155_v53 = vrot.slane %v151_v52, %v154_v49 }
 0x16e   :  { %v156_v55 = vmul.f32 %v155_v53, %v139_v36 }
 0x170   :  { %v161_v56 = vadd.f32 %v160_v54, %v156_v55 }
 0x172   :  { %v162_v58 = vmax.f32 %v161_v56, 0.0 }
 0x174   :  { %v164_v59 = vadd.f32 %v163_v57, %v162_v58 }
 0x176   :  { %165 = vst [vmem:[#allocation7] sm:$0xff] %v164_v59 }
 0x177   :  { %323 = shalt.err (!%p320_p6)
}
 0x178   :  { %s324_s21 = scalar_lea.hbm %s426_s4, 128 }
 0x179   :  { %p325_p7 = scmp.ne.s32.totalorder %s426_s4, %s324_s21  ;;  %p328_p8 = scmp.lt.u32.totalorder %s324_s21, %s426_s4 }
 0x17b   :  { %p330_p9 = pnand %p328_p8, %p325_p7 }
 0x17d   :  { %333 = shalt.err (!%p330_p9)
}
 0x17e   :  { %175 = dma.vmem_to_hbm [thread:$0]  %s173_s18, 128, %s426_s4, [#allocation4]  }
 0x17f   :  { %338 = dma.done.wait [#allocation4], 128  }
 0x180   :  { %339 = vsyncadd [#allocation4], 4294967168 }
 0x181   :  { %179 = vsyncpa [#allocation3], 1 }
 0x182   :  { %180 = vsyncpa [#allocation6], 1 }
 0x183   :  { %181 = vsyncpa [#allocation4], 1 }

</bundles_post_ra>
